<compile_context>
chip_gen: v6e
topology: v6e:2x2x1
jax: 0.10.0
libtpu: 0.0.40
codegen_flags: <defaults>
</compile_context>

<pallas_src>
import numpy as np
import jax
import jax.numpy as jnp
from jax.experimental import pallas as pl
from jax.experimental.pallas import tpu as pltpu

TEMPERATURE = 0.07
HIDDEN = 32          # image_encoder.config.hidden_size (stub)
PROJ_DIM = 1024      # nn.Linear(hidden_size, 1024)
GRAPH_HIDDEN = 32    # graph encoder stub hidden width
PATCH = 4
N_PAD = 128          # node axis padded to a full lane width

_VMEM = pl.BlockSpec(memory_space=pltpu.MemorySpace.VMEM)


# ----------------------------------------------------------------------------
# Fused kernel: image projection + graph encoder stub + contrastive loss
# ----------------------------------------------------------------------------
def _fused_forward_kernel(
    patch_ref,   # [B, S, F]  patchified images (stub-encoder input), F = C*P*P
    wimg_ref,    # [F, P]     folded  W_patch @ W_proj
    bimg_ref,    # [1, P]     folded  b_patch @ W_proj + b_proj
    deg_ref,     # [B, N]     node degrees, zero-padded, node axis on lanes
    mask_ref,    # [B, N]     1.0 for valid nodes
    w1_ref,      # [G, 1]     graph stub Linear(1 -> G) weight
    b1_ref,      # [G, 1]     graph stub Linear(1 -> G) bias
    w2_ref,      # [G, P]     graph stub Linear(G -> P) weight
    b2_ref,      # [1, P]     graph stub Linear(G -> P) bias
    lbl_ref,     # [B, 1]     labels as f32 (0/1)
    loss_ref,    # [1, 1]     OUT: scalar loss
    img_ref,     # [B, P]     OUT: image embeddings
    gemb_ref,    # [B, P]     OUT: graph embeddings
):
    f32 = jnp.float32

    # ---- image branch: mean over patch/sequence axis, fused projector ------
    pmean = jnp.mean(patch_ref[...].astype(f32), axis=1)                # [B, F]
    img_emb = (
        jnp.dot(pmean, wimg_ref[...], preferred_element_type=f32) + bimg_ref[...]
    )                                                                   # [B, P]
    img_ref[...] = img_emb

    # ---- graph branch (stub encoder): ReLU MLP + masked mean pool ----------
    deg = deg_ref[...]                                                  # [B, N]
    mask = mask_ref[...]                                                # [B, N]
    # h1[b, g, n] = relu(deg[b, n] * w1[g] + b1[g]); node axis stays on lanes.
    h1 = jnp.maximum(
        deg[:, None, :] * w1_ref[...][None, :, :] + b1_ref[...][None, :, :], 0.0
    )                                                                   # [B, G, N]
    cnt = jnp.maximum(jnp.sum(mask, axis=-1, keepdims=True), 1.0)       # [B, 1]
    pooled = jnp.sum(h1 * mask[:, None, :], axis=-1) * pl.reciprocal(cnt, approx=True)
    # The final Linear commutes with the mean pool, so it is applied after pooling.
    g_emb = (
        jnp.dot(pooled, w2_ref[...], preferred_element_type=f32) + b2_ref[...]
    )                                                                   # [B, P]
    gemb_ref[...] = g_emb

    # ---- contrastive loss ---------------------------------------------------
    eps = 1e-24  # matches F.normalize's norm.clamp_min(1e-12)
    img_n = img_emb * jax.lax.rsqrt(
        jnp.maximum(jnp.sum(img_emb * img_emb, axis=-1, keepdims=True), eps)
    )
    g_n = g_emb * jax.lax.rsqrt(
        jnp.maximum(jnp.sum(g_emb * g_emb, axis=-1, keepdims=True), eps)
    )
    img_s = img_n * (1.0 / TEMPERATURE)          # fold 1/T (compile-time constant)

    # sim[i, j] = <img_s[i], g_n[j]>  (contraction over the feature axis).
    # TODO(synk): at realistic B, emit g_n pre-transposed as [P, B] from the graph
    # branch to avoid the implied XLU transpose; negligible at B=2.
    sim = jax.lax.dot_general(
        img_s, g_n, (((1,), (1,)), ((), ())), preferred_element_type=f32
    )                                                                   # [B, B]

    row_max = jnp.max(sim, axis=1, keepdims=True)
    lse = jnp.log(jnp.sum(jnp.exp(sim - row_max), axis=1, keepdims=True)) + row_max
    # Only the diagonal of log_softmax is needed: diag(sim) - lse.
    diag = jnp.sum(img_s * g_n, axis=-1, keepdims=True)                 # [B, 1]
    bsz = sim.shape[0]
    loss = -jnp.sum(lbl_ref[...] * (diag - lse), axis=(0, 1), keepdims=True) / bsz
    loss_ref[...] = loss


def fused_forward(patches, w_img, b_img, deg, mask, w1, b1, w2, b2, labels_f32):
    B = patches.shape[0]
    P = w_img.shape[1]
    loss, img_emb, g_emb = pl.pallas_call(
        _fused_forward_kernel,
        out_shape=(
            jax.ShapeDtypeStruct((1, 1), jnp.float32),
            jax.ShapeDtypeStruct((B, P), jnp.float32),
            jax.ShapeDtypeStruct((B, P), jnp.float32),
        ),
        in_specs=[_VMEM] * 10,
        out_specs=(_VMEM, _VMEM, _VMEM),
    )(patches, w_img, b_img, deg, mask, w1, b1, w2, b2, labels_f32)
    return loss[0, 0], img_emb, g_emb


# ----------------------------------------------------------------------------
# Glue: patchify (stub encoder front-end), host degree computation, params
# ----------------------------------------------------------------------------
def patchify(images, patch=PATCH):
    # NCHW -> [B, S, C*patch*patch]
    B, C, H, W = images.shape
    x = images.reshape(B, C, H // patch, patch, W // patch, patch)
    x = x.transpose(0, 2, 4, 1, 3, 5).reshape(
        B, (H // patch) * (W // patch), C * patch * patch
    )
    return x


def compute_node_degrees_padded(adjacency_lists, n_pad=N_PAD):
    # Host-side, ONCE per batch (hoisted out of forward):
    # matches compute_node_degrees (scatter_add of ones over edge_index[0]).
    B = len(adjacency_lists)
    deg = np.zeros((B, n_pad), np.float32)
    mask = np.zeros((B, n_pad), np.float32)
    for b, adj in enumerate(adjacency_lists):
        num_nodes = max(max(u, v) for u, v in adj) + 1
        for (u, _v) in adj:
            deg[b, u] += 1.0
        mask[b, :num_nodes] = 1.0
    return jnp.asarray(deg), jnp.asarray(mask)


def xavier_uniform(key, fan_in, fan_out, shape):
    bound = float(np.sqrt(6.0 / (fan_in + fan_out)))
    return jax.random.uniform(key, shape, jnp.float32, -bound, bound)


def init_params(key):
    k0, k1, k2, k3 = jax.random.split(key, 4)
    return {
        # image encoder stub (patch embedding)
        "w_patch": jax.random.normal(k0, (4 * PATCH * PATCH, HIDDEN), jnp.float32) * 0.02,
        "b_patch": jnp.zeros((HIDDEN,), jnp.float32),
        # img_projector: nn.Linear(hidden, 1024), xavier_uniform weight, zero bias
        "w_proj": xavier_uniform(k1, HIDDEN, PROJ_DIM, (HIDDEN, PROJ_DIM)),
        "b_proj": jnp.zeros((PROJ_DIM,), jnp.float32),
        # graph encoder stub
        "w_g1": xavier_uniform(k2, 1, GRAPH_HIDDEN, (1, GRAPH_HIDDEN)),
        "b_g1": jnp.zeros((GRAPH_HIDDEN,), jnp.float32),
        "w_g2": xavier_uniform(k3, GRAPH_HIDDEN, PROJ_DIM, (GRAPH_HIDDEN, PROJ_DIM)),
        "b_g2": jnp.zeros((PROJ_DIM,), jnp.float32),
    }


def fold_params(params):
    # Offline linearity folding:
    #   mean(patches @ Wp + bp) @ Wproj + bproj
    #     == mean(patches) @ (Wp @ Wproj) + (bp @ Wproj + bproj)
    w_img = params["w_patch"] @ params["w_proj"]                            # [64, 1024]
    b_img = (params["b_patch"] @ params["w_proj"] + params["b_proj"]).reshape(1, -1)
    return {
        "w_img": w_img,
        "b_img": b_img,
        "w_g1": params["w_g1"].reshape(-1, 1),    # [G, 1]
        "b_g1": params["b_g1"].reshape(-1, 1),    # [G, 1]
        "w_g2": params["w_g2"],                   # [G, P]
        "b_g2": params["b_g2"].reshape(1, -1),    # [1, P]
    }


@jax.jit
def forward(folded, images, deg, mask, labels):
    patches = patchify(images)                                  # [B, S, 64]
    labels_f32 = labels.astype(jnp.float32).reshape(-1, 1)      # [B, 1]
    loss, img_emb, g_emb = fused_forward(
        patches,
        folded["w_img"], folded["b_img"],
        deg, mask,
        folded["w_g1"], folded["b_g1"], folded["w_g2"], folded["b_g2"],
        labels_f32,
    )
    return loss, img_emb, g_emb


if __name__ == "__main__":
    key = jax.random.PRNGKey(0)
    k_param, k_img = jax.random.split(key)
    params = init_params(k_param)
    folded = fold_params(params)     # offline weight folding (once)

    B = 2
    images = jax.random.normal(k_img, (B, 4, 16, 16), dtype=jnp.float32)  # NCHW
    adjacency_lists = [
        [(0, 1), (1, 2), (2, 0)],
        [(0, 1), (1, 2), (2, 3), (3, 0), (0, 2)],
    ]
    labels = jnp.array([1, 0], dtype=jnp.int32)

    # Host degree/mask computation hoisted out of the (jitted) forward pass.
    deg, mask = compute_node_degrees_padded(adjacency_lists)

    loss, img_emb, g_emb = forward(folded, images, deg, mask, labels)
    jax.block_until_ready((loss, img_emb, g_emb))

    assert img_emb.shape == (B, PROJ_DIM)
    assert g_emb.shape == (B, PROJ_DIM)
    assert loss.shape == ()
    assert bool(jnp.isfinite(loss))
    print("KERNEL_OK")
</pallas_src>

<mosaic_0001>
module attributes {stable_mosaic.version = 11 : i64} {
  func.func @_fused_forward_kernel(%arg0: memref<2x16x64xf32, #tpu.memory_space<vmem>>, %arg1: memref<64x1024xf32, #tpu.memory_space<vmem>>, %arg2: memref<1x1024xf32, #tpu.memory_space<vmem>>, %arg3: memref<2x128xf32, #tpu.memory_space<vmem>>, %arg4: memref<2x128xf32, #tpu.memory_space<vmem>>, %arg5: memref<32x1xf32, #tpu.memory_space<vmem>>, %arg6: memref<32x1xf32, #tpu.memory_space<vmem>>, %arg7: memref<32x1024xf32, #tpu.memory_space<vmem>>, %arg8: memref<1x1024xf32, #tpu.memory_space<vmem>>, %arg9: memref<2x1xf32, #tpu.memory_space<vmem>>, %arg10: memref<1x1xf32, #tpu.memory_space<vmem>>, %arg11: memref<2x1024xf32, #tpu.memory_space<vmem>>, %arg12: memref<2x1024xf32, #tpu.memory_space<vmem>>) attributes {dimension_semantics = [], scalar_prefetch = 0 : i64, scratch_operands = 0 : i64, tpu.core_type = #tpu.core_type<tc>} {
    %c0 = arith.constant 0 : index
    %c0_0 = arith.constant 0 : index
    %c0_1 = arith.constant 0 : index
    %0 = vector.load %arg0[%c0, %c0_0, %c0_1] : memref<2x16x64xf32, #tpu.memory_space<vmem>>, vector<2x16x64xf32>
    %cst = arith.constant dense<0.000000e+00> : vector<2x64xf32>
    %1 = vector.multi_reduction <add>, %0, %cst [1] : vector<2x16x64xf32> to vector<2x64xf32>
    %cst_2 = arith.constant 1.600000e+01 : f32
    %2 = vector.broadcast %cst_2 : f32 to vector<2x64xf32>
    %3 = arith.divf %1, %2 : vector<2x64xf32>
    %c0_3 = arith.constant 0 : index
    %c0_4 = arith.constant 0 : index
    %4 = vector.load %arg1[%c0_3, %c0_4] : memref<64x1024xf32, #tpu.memory_space<vmem>>, vector<64x1024xf32>
    %cst_5 = arith.constant dense<0.000000e+00> : vector<2x1024xf32>
    %5 = tpu.matmul %3, %4, %cst_5 {dimension_numbers = #tpu.dot_dimension_numbers<[1], [0], [0], [1], [0, 0, 1, 1], [], []>} : vector<2x64xf32>, vector<64x1024xf32>, vector<2x1024xf32> -> vector<2x1024xf32>
    %c0_6 = arith.constant 0 : index
    %c0_7 = arith.constant 0 : index
    %6 = vector.load %arg2[%c0_6, %c0_7] : memref<1x1024xf32, #tpu.memory_space<vmem>>, vector<1x1024xf32>
    %7 = vector.broadcast %6 : vector<1x1024xf32> to vector<2x1024xf32>
    %8 = arith.addf %5, %7 : vector<2x1024xf32>
    %c0_8 = arith.constant 0 : index
    %c0_9 = arith.constant 0 : index
    %9 = vector.load %arg11[%c0_8, %c0_9] : memref<2x1024xf32, #tpu.memory_space<vmem>>, vector<2x1024xf32>
    tpu.vector_store %arg11[%c0_8, %c0_9], %8 {strides = array<i32>} : memref<2x1024xf32, #tpu.memory_space<vmem>>, vector<2x1024xf32>,
    %c0_10 = arith.constant 0 : index
    %c0_11 = arith.constant 0 : index
    %10 = vector.load %arg3[%c0_10, %c0_11] : memref<2x128xf32, #tpu.memory_space<vmem>>, vector<2x128xf32>
    %c0_12 = arith.constant 0 : index
    %c0_13 = arith.constant 0 : index
    %11 = vector.load %arg4[%c0_12, %c0_13] : memref<2x128xf32, #tpu.memory_space<vmem>>, vector<2x128xf32>
    %12 = vector.shape_cast %10 : vector<2x128xf32> to vector<2x1x128xf32>
    %c0_14 = arith.constant 0 : index
    %c0_15 = arith.constant 0 : index
    %13 = vector.load %arg5[%c0_14, %c0_15] : memref<32x1xf32, #tpu.memory_space<vmem>>, vector<32x1xf32>
    %14 = vector.shape_cast %13 : vector<32x1xf32> to vector<1x32x1xf32>
    %15 = vector.broadcast %12 : vector<2x1x128xf32> to vector<2x32x128xf32>
    %16 = vector.broadcast %14 : vector<1x32x1xf32> to vector<2x32x128xf32>
    %17 = arith.mulf %15, %16 : vector<2x32x128xf32>
    %c0_16 = arith.constant 0 : index
    %c0_17 = arith.constant 0 : index
    %18 = vector.load %arg6[%c0_16, %c0_17] : memref<32x1xf32, #tpu.memory_space<vmem>>, vector<32x1xf32>
    %19 = vector.shape_cast %18 : vector<32x1xf32> to vector<1x32x1xf32>
    %20 = vector.broadcast %19 : vector<1x32x1xf32> to vector<2x32x128xf32>
    %21 = arith.addf %17, %20 : vector<2x32x128xf32>
    %cst_18 = arith.constant 0.000000e+00 : f32
    %22 = vector.broadcast %cst_18 : f32 to vector<2x32x128xf32>
    %23 = arith.maximumf %21, %22 : vector<2x32x128xf32>
    %cst_19 = arith.constant dense<0.000000e+00> : vector<2xf32>
    %24 = vector.multi_reduction <add>, %11, %cst_19 [1] : vector<2x128xf32> to vector<2xf32>
    %25 = vector.shape_cast %24 : vector<2xf32> to vector<2x1xf32>
    %cst_20 = arith.constant 1.000000e+00 : f32
    %26 = vector.broadcast %cst_20 : f32 to vector<2x1xf32>
    %27 = arith.maximumf %25, %26 : vector<2x1xf32>
    %28 = vector.shape_cast %11 : vector<2x128xf32> to vector<2x1x128xf32>
    %29 = vector.broadcast %28 : vector<2x1x128xf32> to vector<2x32x128xf32>
    %30 = arith.mulf %23, %29 : vector<2x32x128xf32>
    %cst_21 = arith.constant dense<0.000000e+00> : vector<2x32xf32>
    %31 = vector.multi_reduction <add>, %30, %cst_21 [2] : vector<2x32x128xf32> to vector<2x32xf32>
    %32 = tpu.reciprocal %27 {approx = true} : vector<2x1xf32> -> vector<2x1xf32>
    %33 = vector.broadcast %32 : vector<2x1xf32> to vector<2x32xf32>
    %34 = arith.mulf %31, %33 : vector<2x32xf32>
    %c0_22 = arith.constant 0 : index
    %c0_23 = arith.constant 0 : index
    %35 = vector.load %arg7[%c0_22, %c0_23] : memref<32x1024xf32, #tpu.memory_space<vmem>>, vector<32x1024xf32>
    %cst_24 = arith.constant dense<0.000000e+00> : vector<2x1024xf32>
    %36 = tpu.matmul %34, %35, %cst_24 {dimension_numbers = #tpu.dot_dimension_numbers<[1], [0], [0], [1], [0, 0, 1, 1], [], []>} : vector<2x32xf32>, vector<32x1024xf32>, vector<2x1024xf32> -> vector<2x1024xf32>
    %c0_25 = arith.constant 0 : index
    %c0_26 = arith.constant 0 : index
    %37 = vector.load %arg8[%c0_25, %c0_26] : memref<1x1024xf32, #tpu.memory_space<vmem>>, vector<1x1024xf32>
    %38 = vector.broadcast %37 : vector<1x1024xf32> to vector<2x1024xf32>
    %39 = arith.addf %36, %38 : vector<2x1024xf32>
    %c0_27 = arith.constant 0 : index
    %c0_28 = arith.constant 0 : index
    %40 = vector.load %arg12[%c0_27, %c0_28] : memref<2x1024xf32, #tpu.memory_space<vmem>>, vector<2x1024xf32>
    tpu.vector_store %arg12[%c0_27, %c0_28], %39 {strides = array<i32>} : memref<2x1024xf32, #tpu.memory_space<vmem>>, vector<2x1024xf32>,
    %41 = arith.mulf %8, %8 : vector<2x1024xf32>
    %cst_29 = arith.constant dense<0.000000e+00> : vector<2xf32>
    %42 = vector.multi_reduction <add>, %41, %cst_29 [1] : vector<2x1024xf32> to vector<2xf32>
    %43 = vector.shape_cast %42 : vector<2xf32> to vector<2x1xf32>
    %cst_30 = arith.constant 1.000000e-24 : f32
    %44 = vector.broadcast %cst_30 : f32 to vector<2x1xf32>
    %45 = arith.maximumf %43, %44 : vector<2x1xf32>
    %46 = math.rsqrt %45 : vector<2x1xf32>
    %47 = vector.broadcast %46 : vector<2x1xf32> to vector<2x1024xf32>
    %48 = arith.mulf %8, %47 : vector<2x1024xf32>
    %49 = arith.mulf %39, %39 : vector<2x1024xf32>
    %cst_31 = arith.constant dense<0.000000e+00> : vector<2xf32>
    %50 = vector.multi_reduction <add>, %49, %cst_31 [1] : vector<2x1024xf32> to vector<2xf32>
    %51 = vector.shape_cast %50 : vector<2xf32> to vector<2x1xf32>
    %cst_32 = arith.constant 1.000000e-24 : f32
    %52 = vector.broadcast %cst_32 : f32 to vector<2x1xf32>
    %53 = arith.maximumf %51, %52 : vector<2x1xf32>
    %54 = math.rsqrt %53 : vector<2x1xf32>
    %55 = vector.broadcast %54 : vector<2x1xf32> to vector<2x1024xf32>
    %56 = arith.mulf %39, %55 : vector<2x1024xf32>
    %cst_33 = arith.constant 14.2857141 : f32
    %57 = vector.broadcast %cst_33 : f32 to vector<2x1024xf32>
    %58 = arith.mulf %48, %57 : vector<2x1024xf32>
    %cst_34 = arith.constant dense<0.000000e+00> : vector<2x2xf32>
    %59 = tpu.matmul %58, %56, %cst_34 {dimension_numbers = #tpu.dot_dimension_numbers<[1], [1], [0], [0], [0, 0, 1, 0], [], []>} : vector<2x1024xf32>, vector<2x1024xf32>, vector<2x2xf32> -> vector<2x2xf32>
    %cst_35 = arith.constant dense<0xFF800000> : vector<2xf32>
    %60 = vector.multi_reduction <maximumf>, %59, %cst_35 [1] : vector<2x2xf32> to vector<2xf32>
    %61 = vector.shape_cast %60 : vector<2xf32> to vector<2x1xf32>
    %62 = vector.broadcast %61 : vector<2x1xf32> to vector<2x2xf32>
    %63 = arith.subf %59, %62 : vector<2x2xf32>
    %64 = math.exp %63 : vector<2x2xf32>
    %cst_36 = arith.constant dense<0.000000e+00> : vector<2xf32>
    %65 = vector.multi_reduction <add>, %64, %cst_36 [1] : vector<2x2xf32> to vector<2xf32>
    %66 = vector.shape_cast %65 : vector<2xf32> to vector<2x1xf32>
    %67 = math.log %66 : vector<2x1xf32>
    %68 = arith.addf %67, %61 : vector<2x1xf32>
    %69 = arith.mulf %58, %56 : vector<2x1024xf32>
    %cst_37 = arith.constant dense<0.000000e+00> : vector<2xf32>
    %70 = vector.multi_reduction <add>, %69, %cst_37 [1] : vector<2x1024xf32> to vector<2xf32>
    %71 = vector.shape_cast %70 : vector<2xf32> to vector<2x1xf32>
    %c0_38 = arith.constant 0 : index
    %c0_39 = arith.constant 0 : index
    %72 = vector.load %arg9[%c0_38, %c0_39] : memref<2x1xf32, #tpu.memory_space<vmem>>, vector<2x1xf32>
    %73 = arith.subf %71, %68 : vector<2x1xf32>
    %74 = arith.mulf %72, %73 : vector<2x1xf32>
    %75 = vector.shape_cast %74 : vector<2x1xf32> to vector<1x2x1xf32>
    %cst_40 = arith.constant dense<0.000000e+00> : vector<1xf32>
    %76 = vector.multi_reduction <add>, %75, %cst_40 [1, 2] : vector<1x2x1xf32> to vector<1xf32>
    %77 = vector.shape_cast %76 : vector<1xf32> to vector<1x1x1xf32>
    %78 = vector.extract %77[0, 0, 0] : f32 from vector<1x1x1xf32>
    %79 = vector.broadcast %78 : f32 to vector<1x1xf32>
    %cst_41 = arith.constant 0.000000e+00 : f32
    %80 = vector.broadcast %cst_41 : f32 to vector<1x1xf32>
    %81 = arith.subf %80, %79 : vector<1x1xf32>
    %cst_42 = arith.constant 2.000000e+00 : f32
    %82 = vector.broadcast %cst_42 : f32 to vector<1x1xf32>
    %83 = arith.divf %81, %82 : vector<1x1xf32>
    %c0_43 = arith.constant 0 : index
    %c0_44 = arith.constant 0 : index
    %84 = vector.load %arg10[%c0_43, %c0_44] : memref<1x1xf32, #tpu.memory_space<vmem>>, vector<1x1xf32>
    tpu.vector_store %arg10[%c0_43, %c0_44], %83 {strides = array<i32>} : memref<1x1xf32, #tpu.memory_space<vmem>>, vector<1x1xf32>,
    return
  }
}

</mosaic_0001>

<bundles_post_ra>
// kernel: forward.1
= control target key start
LH: loop header
LB: loop body
LE: loop exit
PB: predicated region body
PF: predicated region fallthrough
CT: control target
= control target key end

     0   :  { %18 = vsyncpa [#allocation3], 0  ;;  %v1734_v2 = vmov 0   ;;  %s2377_s0 = inlined_call_operand.vmem [shape: f32[2,16,64], index: 0, kind: input, shape index: {}]   ;;  %s2378_s1 = inlined_call_operand.vmem [shape: f32[64,1024], index: 1, kind: input, shape index: {}]   ;;  %s2379_s2 = inlined_call_operand.vmem [shape: f32[1,1024], index: 2, kind: input, shape index: {}]   ;;  %s2380_s3 = inlined_call_operand.vmem [shape: f32[2,128], index: 3, kind: input, shape index: {}]   ;;  %s2381_s4 = inlined_call_operand.vmem [shape: f32[2,128], index: 4, kind: input, shape index: {}]   ;;  %s2382_s5 = inlined_call_operand.vmem [shape: f32[32,1], index: 5, kind: input, shape index: {}]   ;;  %s2383_s6 = inlined_call_operand.vmem [shape: f32[32,1], index: 6, kind: input, shape index: {}]   ;;  %s2384_s7 = inlined_call_operand.vmem [shape: f32[32,1024], index: 7, kind: input, shape index: {}]   ;;  %s2385_s8 = inlined_call_operand.vmem [shape: f32[1,1024], index: 8, kind: input, shape index: {}]   ;;  %s2386_s9 = inlined_call_operand.vmem [shape: f32[2,1], index: 9, kind: input, shape index: {}]   ;;  %s2387_s10 = inlined_call_operand.hbm [shape: f32[1,1], index: 10, kind: output, shape index: {0}]   ;;  %s2388_s11 = inlined_call_operand.hbm [shape: f32[2,1024], index: 11, kind: output, shape index: {1}]   ;;  %s2389_s12 = inlined_call_operand.hbm [shape: f32[2,1024], index: 12, kind: output, shape index: {2}]  }
   0x1   :  { %v535_v0 = vld [vmem:[%s2382_s5 + $0x10] sm:$0xff]  ;;  %v533_v1 = vld [vmem:[%s2382_s5] sm:$0xff]  ;;  %1659 = vset.pattern.permute.xlu1 %v1734_v2  ;;  %1658 = vset.pattern.permute.xlu0 %v1734_v2  ;;  %v536_v3 = vld [vmem:[%s2382_s5 + $0x18] sm:$0xff] }
   0x2   :  { %559 = vperm.xlu1 %1659, %v535_v0   ;;  %549 = vperm.xlu0 %1658, %v533_v1   ;;  %v534_v4 = vld [vmem:[%s2382_s5 + $0x8] sm:$0xff] }
   0x3   :  { %19 = vsyncpa [#allocation5], 0  ;;  %v576_v5 = vld [vmem:[%s2383_s6 + $0x8] sm:$0xff]  ;;  %v575_v6 = vld [vmem:[%s2383_s6] sm:$0xff]  ;;  %v1735_v14 = vmov 0.0   ;;  %vm44_vm0 = vcmask 523264  }
   0x4   :  { %v578_v7 = vld [vmem:[%s2383_s6 + $0x18] sm:$0xff]  ;;  %v577_v8 = vld [vmem:[%s2383_s6 + $0x10] sm:$0xff]  ;;  %v123_v9 = vld [vmem:[%s2378_s1 + $0x1c8] sm:$0xff]  ;;  %242 = vmatprep.mubr.f32.mxu0 %v1735_v14  ;;  %vm615_vm1 = vcmask 1041408   ;;  %313 = vmatprep.mubr.f32.mxu1 %v1735_v14  ;;  %vm174_vm2 = vcmask 1041409   ;;  %vm814_vm3 = vcmask 130112  }
   0x5   :  { %v122_v10 = vld [vmem:[%s2378_s1 + $0x1c0] sm:$0xff]  ;;  %v115_v11 = vld [vmem:[%s2378_s1 + $0x188] sm:$0xff]  ;;  %194 = vmatprep.subr.mxu0 %v123_v9  ;;  %v125_v13 = vld [vmem:[%s2378_s1 + $0x1d8] sm:$0xff]  ;;  %vm821_vm4 = vcmask 195712   ;;  %vm828_vm5 = vcmask 261312   ;;  %vm850_vm6 = vcmask 261120  }
   0x6   :  { %564 = vperm.xlu1 %1659, %v536_v3   ;;  %554 = vperm.xlu0 %1658, %v534_v4   ;;  %v114_v12 = vld [vmem:[%s2378_s1 + $0x180] sm:$0xff]  ;;  %v107_v15 = vld [vmem:[%s2378_s1 + $0x148] sm:$0xff]  ;;  %v124_v16 = vld [vmem:[%s2378_s1 + $0x1d0] sm:$0xff]  ;;  %vm1541_vm7 = vcmask 9216   ;;  %vm1582_vm8 = vcmask 1024   ;;  %s1738_s25 = smov [#allocation4]  }
   0x7   :  { %195 = vmatpush1.msra.mxu0 %v122_v10  ;;  %265 = vmatprep.subr.mxu1 %v125_v13  ;;  %v106_v17 = vld [vmem:[%s2378_s1 + $0x140] sm:$0xff]  ;;  %v117_v18 = vld [vmem:[%s2378_s1 + $0x198] sm:$0xff]  ;;  %v116_v19 = vld [vmem:[%s2378_s1 + $0x190] sm:$0xff]  ;;  %s1615_s6 = sshll.u32 %s1738_s25, 4  ;;  %s1616_s6 = int_to_ptr.vmem [resolvable:$true] %s1615_s6 }
   0x8   :  { %196 = vmatprep.subr.mxu0 %v115_v11  ;;  %266 = vmatpush1.msra.mxu1 %v124_v16  ;;  %v99_v20 = vld [vmem:[%s2378_s1 + $0x108] sm:$0xff]  ;;  %v109_v21 = vld [vmem:[%s2378_s1 + $0x158] sm:$0xff]  ;;  %v98_v22 = vld [vmem:[%s2378_s1 + $0x100] sm:$0xff]  ;;  %s1670_s26 = scalar_lea.vmem %s1616_s6, 256  ;;  %p1675_p1 = scmp.lt.s32.totalorder %s1616_s6, %s1616_s6 }
   0x9   :  { %197 = vmatpush1.msra.mxu0 %v114_v12  ;;  %267 = vmatprep.subr.mxu1 %v117_v18  ;;  %v108_v23 = vld [vmem:[%s2378_s1 + $0x150] sm:$0xff]  ;;  %v101_v24 = vld [vmem:[%s2378_s1 + $0x118] sm:$0xff]  ;;  %v91_v25 = vld [vmem:[%s2378_s1 + $0xc8] sm:$0xff]  ;;  %p1671_p0 = scmp.ne.s32.totalorder %s1616_s6, %s1670_s26  ;;  %p1676_p2 = scmp.lt.s32.totalorder %s1670_s26, %s1670_s26 }
   0xa   :  { %586 = vperm.xlu1 %1659, %v576_v5   ;;  %581 = vperm.xlu0 %1658, %v575_v6   ;;  %v100_v26 = vld [vmem:[%s2378_s1 + $0x110] sm:$0xff]  ;;  %v90_v27 = vld [vmem:[%s2378_s1 + $0xc0] sm:$0xff]  ;;  %v93_v28 = vld [vmem:[%s2378_s1 + $0xd8] sm:$0xff] }
   0xb   :  { %198 = vmatprep.subr.mxu0 %v107_v15  ;;  %268 = vmatpush1.msra.mxu1 %v116_v19  ;;  %v83_v29 = vld [vmem:[%s2378_s1 + $0x88] sm:$0xff]  ;;  %v82_v30 = vld [vmem:[%s2378_s1 + $0x80] sm:$0xff]  ;;  %v92_v31 = vld [vmem:[%s2378_s1 + $0xd0] sm:$0xff]  ;;  %p1677_p3 = por %p1676_p2, %p1675_p1 }
   0xc   :  { %199 = vmatpush1.msra.mxu0 %v106_v17  ;;  %269 = vmatprep.subr.mxu1 %v109_v21  ;;  %v75_v32 = vld [vmem:[%s2378_s1 + $0x48] sm:$0xff]  ;;  %v85_v33 = vld [vmem:[%s2378_s1 + $0x98] sm:$0xff]  ;;  %v84_v34 = vld [vmem:[%s2378_s1 + $0x90] sm:$0xff] }
   0xd   :  { %200 = vmatprep.subr.mxu0 %v99_v20  ;;  %270 = vmatpush1.msra.mxu1 %v108_v23  ;;  %v40_v35 = vld [vmem:[%s2377_s0] sm:$0xff]  ;;  %v41_v36 = vld [vmem:[%s2377_s0 + $0x8] sm:$0xff]  ;;  %v42_v37 = vld [vmem:[%s2377_s0 + $0x10] sm:$0xff]  ;;  %p1678_p4 = pnand %p1677_p3, %p1671_p0 }
   0xe   :  { %596 = vperm.xlu1 %1659, %v578_v7   ;;  %591 = vperm.xlu0 %1658, %v577_v8   ;;  %v74_v38 = vld [vmem:[%s2378_s1 + $0x40] sm:$0xff]  ;;  %v77_v39 = vld [vmem:[%s2378_s1 + $0x58] sm:$0xff]  ;;  %v45_v41 = vsel %vm44_vm0, %v40_v35, 0.0  ;;  %v46_v42 = vsel %vm44_vm0, %v41_v36, 0.0  ;;  %v54_v43 = vsel %vm44_vm0, %v42_v37, 0.0  ;;  %v67_v44 = vld [vmem:[%s2378_s1 + $0x8] sm:$0xff] }
   0xf   :  { %201 = vmatpush1.msra.mxu0 %v98_v22  ;;  %271 = vmatprep.subr.mxu1 %v101_v24  ;;  %v43_v40 = vld [vmem:[%s2377_s0 + $0x18] sm:$0xff]  ;;  %v47_v45 = vadd.f32 %v46_v42, %v45_v41  ;;  %v76_v47 = vld [vmem:[%s2378_s1 + $0x50] sm:$0xff]  ;;  %v66_v48 = vld [vmem:[%s2378_s1] sm:$0xff] }
  0x10   :  { %202 = vmatprep.subr.mxu0 %v91_v25  ;;  %272 = vmatpush1.msra.mxu1 %v100_v26  ;;  %v55_v46 = vsel %vm44_vm0, %v43_v40, 0.0  ;;  %v69_v50 = vld [vmem:[%s2378_s1 + $0x18] sm:$0xff]  ;;  %v1943_v51 = vld [vmem:[%s2381_s4] sm:$0x3]  ;;  %v127_v52 = vld [vmem:[%s2378_s1 + $0x1e8] sm:$0xff]  ;;  %v132_v40 = vlaneseq }
  0x11   :  { %203 = vmatpush1.msra.mxu0 %v90_v27  ;;  %273 = vmatprep.subr.mxu1 %v93_v28  ;;  %v56_v49 = vadd.f32 %v55_v46, %v54_v43  ;;  %v48_v53 = vrot.slane %v47_v45, 4  ;;  %v68_v54 = vld [vmem:[%s2378_s1 + $0x10] sm:$0xff]  ;;  %v129_v56 = vld [vmem:[%s2378_s1 + $0x1f8] sm:$0xff]  ;;  %v616_v58 = vsel %vm615_vm1, %v1943_v51, 0.0  ;;  %v126_v6 = vld [vmem:[%s2378_s1 + $0x1e0] sm:$0xff] }
  0x12   :  { %204 = vmatprep.subr.mxu0 %v83_v29  ;;  %274 = vmatpush1.msra.mxu1 %v92_v31  ;;  %v128_v7 = vld [vmem:[%s2378_s1 + $0x1f0] sm:$0xff]  ;;  %v119_v9 = vld [vmem:[%s2378_s1 + $0x1a8] sm:$0xff]  ;;  %v121_v10 = vld [vmem:[%s2378_s1 + $0x1b8] sm:$0xff]  ;;  %v2063_v42 = vshrl.u32 %v132_v40, 7 }
  0x13   :  { %205 = vmatpush1.msra.mxu0 %v82_v30  ;;  %275 = vmatprep.subr.mxu1 %v85_v33  ;;  %v57_v55 = vrot.slane %v56_v49, 4  ;;  %v49_v57 = vadd.f32 %v48_v53, %v47_v45  ;;  %v118_v11 = vld [vmem:[%s2378_s1 + $0x1a0] sm:$0xff]  ;;  %v120_v12 = vld [vmem:[%s2378_s1 + $0x1b0] sm:$0xff]  ;;  %v111_v13 = vld [vmem:[%s2378_s1 + $0x168] sm:$0xff] }
  0x14   :  { %206 = vmatprep.subr.mxu0 %v75_v32  ;;  %276 = vmatpush1.msra.mxu1 %v84_v34  ;;  %v113_v15 = vld [vmem:[%s2378_s1 + $0x178] sm:$0xff]  ;;  %v110_v16 = vld [vmem:[%s2378_s1 + $0x160] sm:$0xff]  ;;  %v112_v17 = vld [vmem:[%s2378_s1 + $0x170] sm:$0xff]  ;;  %v2070_v46 = vsub.s32 0, %v2063_v42 }
  0x15   :  { %207 = vmatpush1.msra.mxu0 %v74_v38  ;;  %277 = vmatprep.subr.mxu1 %v77_v39  ;;  %v58_v59 = vadd.f32 %v57_v55, %v56_v49  ;;  %v50_v60 = vrot.slane %v49_v57, 2  ;;  %v103_v18 = vld [vmem:[%s2378_s1 + $0x128] sm:$0xff]  ;;  %v105_v19 = vld [vmem:[%s2378_s1 + $0x138] sm:$0xff]  ;;  %v102_v20 = vld [vmem:[%s2378_s1 + $0x120] sm:$0xff]  ;;  %v1736_v38 = vmov 1966171168  }
  0x16   :  { %208 = vmatprep.subr.mxu0 %v67_v44  ;;  %278 = vmatpush1.msra.mxu1 %v76_v47  ;;  %v104_v21 = vld [vmem:[%s2378_s1 + $0x130] sm:$0xff]  ;;  %v95_v22 = vld [vmem:[%s2378_s1 + $0xe8] sm:$0xff]  ;;  %v97_v23 = vld [vmem:[%s2378_s1 + $0xf8] sm:$0xff]  ;;  %v520_v39 = vunpack.c.l.s4 %v1736_v38  ;;  %v2079_v38 = vsub.s32 1, %v2063_v42 }
  0x17   :  { %209 = vmatpush1.msra.mxu0 %v66_v48  ;;  %279 = vmatprep.subr.mxu1 %v69_v50  ;;  %v59_v61 = vrot.slane %v58_v59, 2  ;;  %v51_v62 = vadd.f32 %v50_v60, %v49_v57  ;;  %v94_v24 = vld [vmem:[%s2378_s1 + $0xe0] sm:$0xff]  ;;  %v96_v25 = vld [vmem:[%s2378_s1 + $0xf0] sm:$0xff]  ;;  %v87_v26 = vld [vmem:[%s2378_s1 + $0xa8] sm:$0xff] }
  0x18   :  { %336 = vmatprep.subr.mxu0 %v127_v52  ;;  %280 = vmatpush1.msra.mxu1 %v68_v54  ;;  %v89_v27 = vld [vmem:[%s2378_s1 + $0xb8] sm:$0xff]  ;;  %v86_v28 = vld [vmem:[%s2378_s1 + $0xa0] sm:$0xff]  ;;  %v79_v29 = vld [vmem:[%s2378_s1 + $0x68] sm:$0xff]  ;;  %v521_v41 = vunpack.c.0.s8 %v520_v39 }
  0x19   :  { %407 = vmatprep.subr.mxu1 %v129_v56  ;;  %v60_v63 = vadd.f32 %v59_v61, %v58_v59  ;;  %v52_v0 = vrot.slane %v51_v62, 1  ;;  %v88_v30 = vld [vmem:[%s2378_s1 + $0xb0] sm:$0xff]  ;;  %v78_v31 = vld [vmem:[%s2378_s1 + $0x60] sm:$0xff]  ;;  %v81_v32 = vld [vmem:[%s2378_s1 + $0x78] sm:$0xff] }
  0x1a   :  { %v71_v33 = vld [vmem:[%s2378_s1 + $0x28] sm:$0xff]  ;;  %v80_v34 = vld [vmem:[%s2378_s1 + $0x70] sm:$0xff]  ;;  %v70_v35 = vld [vmem:[%s2378_s1 + $0x20] sm:$0xff]  ;;  %v524_v44 = vsub.s32 %v521_v41, %v2063_v42 }
  0x1b   :  { %v61_v1 = vrot.slane %v60_v63, 1  ;;  %v53_v2 = vadd.f32 %v52_v0, %v51_v62  ;;  %v73_v36 = vld [vmem:[%s2378_s1 + $0x38] sm:$0xff]  ;;  %v72_v37 = vld [vmem:[%s2378_s1 + $0x30] sm:$0xff] }
  0x1c   :  { %v1644_v43 = vld.sshfl [vmem:[%s2380_s3] sm:$0x11 pattern:$0x75316420]  ;;  %v627_v49 = vrot.slane %v1943_v51, %v524_v44 }
  0x1d   :  { %v62_v3 = vadd.f32 %v61_v1, %v60_v63  ;;  %v64_v4 = vmul.f32 0.0625, %v53_v2  ;;  %v518_v45 = vcombine.high %v1644_v43, %v1644_v43  ;;  %v525_v47 = vrot.slane %v1644_v43, %v524_v44 }
  0x1e   :  { %v628_v55 = vcombine.high %v627_v49, %v627_v49 }
  0x1f   :  { %v65_v5 = vmul.f32 0.0625, %v62_v3  ;;  %v532_v48 = vrot.slane %v518_v45, %v524_v44  ;;  %v540_v53 = vrot.slane %v525_v47, %v2070_v46 }
  0x20   :  { %v642_v63 = vrot.slane %v628_v55, %v524_v44  ;;  %v723_v55 = vld [vmem:[%s2384_s7 + $0xd0] sm:$0xff] }
  0x21   :  { %v1964_v8 = vsel %vm174_vm2, %v65_v5, %v64_v4  ;;  %v544_v54 = vrot.slane %v532_v48, %v2070_v46 }
  0x22   :  { %1640 = vmatmul.mubr.msk.f32.vlgmr.msra.gmra.mxu0 %vm44_vm0, %v1964_v8  ;;  %1641 = vmatmul.mubr.msk.f32.vlgmr.msra.gmra.mxu1 %vm44_vm0, %v1964_v8 }
  0x23   :  { %337 = vmatpush1.msra.mxu0 %v126_v6  ;;  %408 = vmatpush1.msra.mxu1 %v128_v7 }
  0x24   :  { %338 = vmatprep.subr.mxu0 %v119_v9  ;;  %409 = vmatprep.subr.mxu1 %v121_v10 }
  0x25   :  { %339 = vmatpush1.msra.mxu0 %v118_v11  ;;  %410 = vmatpush1.msra.mxu1 %v120_v12  ;;  %v650_v11 = vrot.slane %v642_v63, %v2070_v46 }
  0x26   :  { %340 = vmatprep.subr.mxu0 %v111_v13  ;;  %411 = vmatprep.subr.mxu1 %v113_v15 }
  0x27   :  { %341 = vmatpush1.msra.mxu0 %v110_v16  ;;  %412 = vmatpush1.msra.mxu1 %v112_v17 }
  0x28   :  { %342 = vmatprep.subr.mxu0 %v103_v18  ;;  %413 = vmatprep.subr.mxu1 %v105_v19 }
  0x29   :  { %343 = vmatpush1.msra.mxu0 %v102_v20  ;;  %414 = vmatpush1.msra.mxu1 %v104_v21 }
  0x2a   :  { %344 = vmatprep.subr.mxu0 %v95_v22  ;;  %415 = vmatprep.subr.mxu1 %v97_v23 }
  0x2b   :  { %345 = vmatpush1.msra.mxu0 %v94_v24  ;;  %416 = vmatpush1.msra.mxu1 %v96_v25 }
  0x2c   :  { %346 = vmatprep.subr.mxu0 %v87_v26  ;;  %417 = vmatprep.subr.mxu1 %v89_v27 }
  0x2d   :  { %617 = vadd.xlane.f32.xlu0 %v616_v58  ;;  %347 = vmatpush1.msra.mxu0 %v86_v28  ;;  %v635_v58 = vrot.slane %v627_v49, %v524_v44 }
  0x2e   :  { %384 = vmatprep.mubr.f32.mxu0 %v1735_v14  ;;  %348 = vmatprep.subr.mxu0 %v79_v29 }
  0x2f   :  { %418 = vmatpush1.msra.mxu1 %v88_v30  ;;  %349 = vmatpush1.msra.mxu0 %v78_v31  ;;  %v646_v5 = vrot.slane %v635_v58, %v2070_v46 }
  0x30   :  { %419 = vmatprep.subr.mxu1 %v81_v32  ;;  %350 = vmatprep.subr.mxu0 %v71_v33 }
  0x31   :  { %420 = vmatpush1.msra.mxu1 %v80_v34  ;;  %351 = vmatpush1.msra.mxu0 %v70_v35 }
  0x32   :  { %421 = vmatprep.subr.mxu1 %v73_v36  ;;  %1642 = vmatmul.mubr.msk.f32.vlgmr.msra.gmra.mxu0 %vm44_vm0, %v1964_v8 }
  0x33   :  { %422 = vmatpush1.msra.mxu1 %v72_v37  ;;  %455 = vmatprep.mubr.f32.mxu1 %v1735_v14 }
  0x34   :  { %917 = vmatprep.mubr.f32.mxu0 %v1735_v14  ;;  %1643 = vmatmul.mubr.msk.f32.vlgmr.msra.gmra.mxu1 %vm44_vm0, %v1964_v8 }
  0x35   :  { %988 = vmatprep.mubr.f32.mxu1 %v1735_v14 }
  0x7d   :  { %v560_v50 = vpop.permute.xlu1 %559  ;;  %v550_v52 = vpop.permute.xlu0 %549 }
  0x7e   :  { %v567_v59 = vmul.f32 %v550_v52, %v540_v53  ;;  %v571_v60 = vmul.f32 %v550_v52, %v544_v54  ;;  %v569_v8 = vmul.f32 %v560_v50, %v540_v53  ;;  %v573_v9 = vmul.f32 %v560_v50, %v544_v54  ;;  %v722_v52 = vld [vmem:[%s2384_s7 + $0xc8] sm:$0xff] }
  0x7f   :  { %877 = vmatprep.subr.mxu0 %v722_v52 }
  0x81   :  { %v565_v56 = vpop.permute.xlu1 %564  ;;  %v555_v57 = vpop.permute.xlu0 %554 }
  0x82   :  { %v568_v61 = vmul.f32 %v555_v57, %v540_v53  ;;  %v572_v62 = vmul.f32 %v555_v57, %v544_v54  ;;  %v570_v20 = vmul.f32 %v565_v56, %v540_v53  ;;  %v574_v21 = vmul.f32 %v565_v56, %v544_v54  ;;  %v724_v53 = vld [vmem:[%s2384_s7 + $0xd8] sm:$0xff]  ;;  %v721_v54 = vld [vmem:[%s2384_s7 + $0xc0] sm:$0xff]  ;;  %v714_v56 = vld [vmem:[%s2384_s7 + $0x88] sm:$0xff] }
  0x83   :  { %948 = vmatprep.subr.mxu1 %v724_v53  ;;  %v716_v57 = vld [vmem:[%s2384_s7 + $0x98] sm:$0xff]  ;;  %878 = vmatpush1.msra.mxu0 %v721_v54 }
  0x84   :  { %949 = vmatpush1.msra.mxu1 %v723_v55  ;;  %879 = vmatprep.subr.mxu0 %v714_v56  ;;  %v162_v56 = vsub.s32 7, %v2063_v42 }
  0x85   :  { %v587_v0 = vpop.permute.xlu1 %586  ;;  %v582_v1 = vpop.permute.xlu0 %581  ;;  %950 = vmatprep.subr.mxu1 %v716_v57 }
  0x86   :  { %v600_v2 = vadd.f32 %v587_v0, %v568_v61  ;;  %v604_v3 = vadd.f32 %v587_v0, %v572_v62  ;;  %v599_v51 = vadd.f32 %v582_v1, %v567_v59  ;;  %v603_v4 = vadd.f32 %v582_v1, %v571_v60  ;;  %v713_v60 = vld [vmem:[%s2384_s7 + $0x80] sm:$0xff]  ;;  %v715_v61 = vld [vmem:[%s2384_s7 + $0x90] sm:$0xff]  ;;  %v706_v0 = vld [vmem:[%s2384_s7 + $0x48] sm:$0xff] }
  0x87   :  { %v708_v1 = vld [vmem:[%s2384_s7 + $0x58] sm:$0xff]  ;;  %880 = vmatpush1.msra.mxu0 %v713_v60  ;;  %951 = vmatpush1.msra.mxu1 %v715_v61 }
  0x88   :  { %v608_v6 = vmax.f32 %v600_v2, 0.0  ;;  %v607_v7 = vmax.f32 %v599_v51, 0.0  ;;  %v612_v12 = vmax.f32 %v604_v3, 0.0  ;;  %v611_v13 = vmax.f32 %v603_v4, 0.0  ;;  %v705_v2 = vld [vmem:[%s2384_s7 + $0x40] sm:$0xff]  ;;  %v707_v3 = vld [vmem:[%s2384_s7 + $0x50] sm:$0xff]  ;;  %881 = vmatprep.subr.mxu0 %v706_v0  ;;  %952 = vmatprep.subr.mxu1 %v708_v1 }
  0x89   :  { %v592_v10 = vpop.permute.xlu0 %591  ;;  %v597_v15 = vpop.permute.xlu1 %596  ;;  %v2121_v51 = vld [vmem:[%s2379_s2] sm:$0xff]  ;;  %882 = vmatpush1.msra.mxu0 %v705_v2  ;;  %953 = vmatpush1.msra.mxu1 %v707_v3 }
  0x8a   :  { %v601_v16 = vadd.f32 %v592_v10, %v569_v8  ;;  %v605_v17 = vadd.f32 %v592_v10, %v573_v9  ;;  %v654_v18 = vmul.f32 %v646_v5, %v608_v6  ;;  %v653_v19 = vmul.f32 %v646_v5, %v607_v7  ;;  %v700_v6 = vld [vmem:[%s2384_s7 + $0x18] sm:$0xff] }
  0x8b   :  { %v602_v22 = vadd.f32 %v597_v15, %v570_v20  ;;  %v606_v23 = vadd.f32 %v597_v15, %v574_v21  ;;  %v657_v26 = vmul.f32 %v650_v11, %v611_v13  ;;  %v658_v27 = vmul.f32 %v650_v11, %v612_v12  ;;  %954 = vmatprep.subr.mxu1 %v700_v6  ;;  %v726_v21 = vld [vmem:[%s2384_s7 + $0xe8] sm:$0xff] }
  0x8c   :  { %663 = vadd.xlane.f32.xlu0 %v654_v18  ;;  %661 = vadd.xlane.f32.xlu1 %v653_v19  ;;  %v609_v24 = vmax.f32 %v601_v16, 0.0  ;;  %v613_v25 = vmax.f32 %v605_v17, 0.0  ;;  %v135_v9 = vrot.slane %v2121_v51, %v2070_v46  ;;  %v139_v10 = vrot.slane %v2121_v51, %v2079_v38  ;;  %v697_v16 = vld [vmem:[%s2384_s7] sm:$0xff]  ;;  %v699_v17 = vld [vmem:[%s2384_s7 + $0x10] sm:$0xff] }
  0x8d   :  { %v610_v28 = vmax.f32 %v602_v22, 0.0  ;;  %v614_v29 = vmax.f32 %v606_v23, 0.0  ;;  %v728_v22 = vld [vmem:[%s2384_s7 + $0xf8] sm:$0xff]  ;;  %955 = vmatpush1.msra.mxu1 %v699_v17  ;;  %v163_v61 = vrot.slane %v2121_v51, %v162_v56 }
  0x8e   :  { %v655_v30 = vmul.f32 %v646_v5, %v609_v24  ;;  %v659_v31 = vmul.f32 %v650_v11, %v613_v25  ;;  %v146_v24 = vsub.s32 3, %v2063_v42  ;;  %1090 = vmatprep.subr.mxu1 %v728_v22 }
  0x8f   :  { %v656_v32 = vmul.f32 %v646_v5, %v610_v28  ;;  %v660_v33 = vmul.f32 %v650_v11, %v614_v29  ;;  %v698_v5 = vld [vmem:[%s2384_s7 + $0x8] sm:$0xff]  ;;  %v142_v11 = vsub.s32 2, %v2063_v42 }
  0x90   :  { %669 = vadd.xlane.f32.xlu0 %v657_v26  ;;  %671 = vadd.xlane.f32.xlu1 %v658_v27  ;;  %v147_v28 = vrot.slane %v2121_v51, %v146_v24 }
  0x91   :  { %883 = vmatprep.subr.mxu0 %v698_v5  ;;  %v143_v23 = vrot.slane %v2121_v51, %v142_v11 }
  0x92   :  { %884 = vmatpush1.msra.mxu0 %v697_v16 }
  0x93   :  { %1019 = vmatprep.subr.mxu0 %v726_v21 }
  0x94   :  { %665 = vadd.xlane.f32.xlu0 %v655_v30  ;;  %673 = vadd.xlane.f32.xlu1 %v659_v31  ;;  %v150_v30 = vsub.s32 4, %v2063_v42 }
  0x98   :  { %667 = vadd.xlane.f32.xlu0 %v656_v32  ;;  %675 = vadd.xlane.f32.xlu1 %v660_v33 }
  0xb6   :  { %v618_v34 = vpop.xlane.xlu0 %617 }
  0xb7   :  { %v619_v35 = vmax.f32 %v618_v34, 1.0 }
  0xb9   :  { %1660 = vrcp.f32 %v619_v35 }
  0xc6   :  { %v1661_v36 = vpop.eup %1660 }
  0xc7   :  { %v682_v37 = vrot.slane %v1661_v36, %v2070_v46  ;;  %v686_v45 = vrot.slane %v1661_v36, %v2079_v38  ;;  %v151_v36 = vrot.slane %v2121_v51, %v150_v30 }
  0xe2   :  { %v244_v4 = vpop.f32.mrf.mxu0  ;;  %v315_v18 = vpop.f32.mrf.mxu1 }
  0xe3   :  { %v2140_v19 = vadd.f32 %v244_v4, %v135_v9  ;;  %v2158_v27 = vadd.f32 %v315_v18, %v143_v23 }
  0xe4   :  { %v246_v15 = vpop.f32.mrf.mxu0  ;;  %v317_v29 = vpop.f32.mrf.mxu1 }
  0xe5   :  { %v2142_v20 = vadd.f32 %v246_v15, %v139_v10  ;;  %v1183_v25 = vmul.f32 %v2140_v19, %v2140_v19  ;;  %v1185_v34 = vmul.f32 %v2158_v27, %v2158_v27  ;;  %v2168_v35 = vadd.f32 %v317_v29, %v147_v28 }
  0xe7   :  { %v1184_v26 = vmul.f32 %v2142_v20, %v2142_v20  ;;  %v1191_v31 = vsel %vm615_vm1, %v1183_v25, 0.0 }
  0xe9   :  { %v1192_v32 = vsel %vm615_vm1, %v1184_v26, 0.0 }
  0xea   :  { %v1193_v33 = vadd.f32 %v1192_v32, %v1191_v31 }
  0xf4   :  { %v457_v55 = vpop.f32.mrf.mxu1 }
 0x115   :  { %v664_v39 = vpop.xlane.xlu0 %663  ;;  %v662_v41 = vpop.xlane.xlu1 %661 }
 0x116   :  { %v690_v43 = vmul.f32 %v682_v37, %v664_v39  ;;  %v689_v44 = vmul.f32 %v682_v37, %v662_v41  ;;  %v154_v39 = vsub.s32 5, %v2063_v42  ;;  %v1194_v41 = vsel %vm615_vm1, %v1185_v34, 0.0 }
 0x118   :  { %783 = vperm.xlu1 %1659, %v690_v43   ;;  %780 = vperm.xlu0 %1658, %v689_v44   ;;  %v1186_v43 = vmul.f32 %v2168_v35, %v2168_v35 }
 0x119   :  { %v670_v47 = vpop.xlane.xlu0 %669  ;;  %v672_v48 = vpop.xlane.xlu1 %671 }
 0x11a   :  { %v693_v49 = vmul.f32 %v686_v45, %v670_v47  ;;  %v694_v50 = vmul.f32 %v686_v45, %v672_v48  ;;  %v1195_v47 = vadd.f32 %v1194_v41, %v1193_v33  ;;  %v155_v48 = vrot.slane %v2121_v51, %v154_v39 }
 0x11c   :  { %792 = vperm.xlu1 %1659, %v693_v49   ;;  %795 = vperm.xlu0 %1658, %v694_v50   ;;  %v158_v49 = vsub.s32 6, %v2063_v42  ;;  %v1196_v50 = vsel %vm615_vm1, %v1186_v43, 0.0 }
 0x11d   :  { %v666_v58 = vpop.xlane.xlu0 %665  ;;  %v674_v59 = vpop.xlane.xlu1 %673  ;;  %v1197_v57 = vadd.f32 %v1196_v50, %v1195_v47 }
 0x11e   :  { %v691_v62 = vmul.f32 %v682_v37, %v666_v58  ;;  %v695_v63 = vmul.f32 %v686_v45, %v674_v59  ;;  %v159_v54 = vrot.slane %v2121_v51, %v158_v49  ;;  %v804_v51 = vand.u32 127, %v132_v40 }
 0x120   :  { %786 = vperm.xlu1 %1659, %v691_v62   ;;  %798 = vperm.xlu0 %1658, %v695_v63   ;;  %v2195_v60 = vadd.f32 %v457_v55, %v159_v54  ;;  %v459_v62 = vpop.f32.mrf.mxu1  ;;  %v823_v17 = vadd.s32 4294967272, %v804_v51  ;;  %v807_v18 = vsub.s32 %v804_v51, %v2063_v42  ;;  %v725_v54 = vld [vmem:[%s2384_s7 + $0xe0] sm:$0xff]  ;;  %v727_v55 = vld [vmem:[%s2384_s7 + $0xf0] sm:$0xff] }
 0x121   :  { %v668_v7 = vpop.xlane.xlu0 %667  ;;  %v676_v8 = vpop.xlane.xlu1 %675  ;;  %v2202_v1 = vadd.f32 %v459_v62, %v163_v61  ;;  %v717_v61 = vld [vmem:[%s2384_s7 + $0xa0] sm:$0xff]  ;;  %v719_v62 = vld [vmem:[%s2384_s7 + $0xb0] sm:$0xff] }
 0x122   :  { %v692_v12 = vmul.f32 %v682_v37, %v668_v7  ;;  %v696_v13 = vmul.f32 %v686_v45, %v676_v8  ;;  %v386_v37 = vpop.f32.mrf.mxu0  ;;  %v1189_v0 = vmul.f32 %v2195_v60, %v2195_v60  ;;  %v826_v26 = vsub.s32 %v823_v17, %v2063_v42 }
 0x123   :  { %v2177_v44 = vadd.f32 %v386_v37, %v151_v36  ;;  %v1190_v4 = vmul.f32 %v2202_v1, %v2202_v1 }
 0x124   :  { %789 = vperm.xlu1 %1659, %v692_v12   ;;  %801 = vperm.xlu0 %1658, %v696_v13   ;;  %v388_v45 = vpop.f32.mrf.mxu0  ;;  %v1202_v5 = vsel %vm615_vm1, %v1189_v0, 0.0  ;;  %v809_v12 = vadd.s32 4294967288, %v804_v51  ;;  %v816_v13 = vadd.s32 4294967280, %v804_v51  ;;  %v712_v0 = vld [vmem:[%s2384_s7 + $0x78] sm:$0xff] }
 0x125   :  { %v1187_v52 = vmul.f32 %v2177_v44, %v2177_v44  ;;  %v2186_v53 = vadd.f32 %v388_v45, %v155_v48  ;;  %v1204_v7 = vsel %vm615_vm1, %v1190_v4, 0.0  ;;  %v702_v4 = vld [vmem:[%s2384_s7 + $0x28] sm:$0xff] }
 0x126   :  { %v812_v21 = vsub.s32 %v809_v12, %v2063_v42  ;;  %v819_v22 = vsub.s32 %v816_v13, %v2063_v42  ;;  %v470_v12 = vcombine.low %v2140_v19, %v2142_v20  ;;  %v471_v13 = vcombine.low %v2158_v27, %v2168_v35 }
 0x127   :  { %v1198_v58 = vsel %vm615_vm1, %v1187_v52, 0.0  ;;  %v1188_v59 = vmul.f32 %v2186_v53, %v2186_v53 }
 0x128   :  { %v1199_v63 = vadd.f32 %v1198_v58, %v1197_v57  ;;  %v718_v58 = vld [vmem:[%s2384_s7 + $0xa8] sm:$0xff] }
 0x129   :  { %v1200_v2 = vsel %vm615_vm1, %v1188_v59, 0.0  ;;  %v720_v59 = vld [vmem:[%s2384_s7 + $0xb8] sm:$0xff] }
 0x12a   :  { %v1201_v3 = vadd.f32 %v1200_v2, %v1199_v63  ;;  %v710_v63 = vld [vmem:[%s2384_s7 + $0x68] sm:$0xff]  ;;  %v709_v2 = vld [vmem:[%s2384_s7 + $0x60] sm:$0xff] }
 0x12c   :  { %v1203_v6 = vadd.f32 %v1202_v5, %v1201_v3  ;;  %v711_v3 = vld [vmem:[%s2384_s7 + $0x70] sm:$0xff]  ;;  %v704_v5 = vld [vmem:[%s2384_s7 + $0x38] sm:$0xff] }
 0x12e   :  { %v1205_v8 = vadd.f32 %v1204_v7, %v1203_v6  ;;  %v701_v6 = vld [vmem:[%s2384_s7 + $0x20] sm:$0xff]  ;;  %v703_v7 = vld [vmem:[%s2384_s7 + $0x30] sm:$0xff] }
 0x143   :  { %1206 = vadd.xlane.f32.xlu0 %v1205_v8 }
 0x193   :  { %v781_v9 = vpop.permute.xlu0 %780  ;;  %v784_v10 = vpop.permute.xlu1 %783 }
 0x194   :  { %v808_v28 = vrot.slane %v781_v9, %v807_v18  ;;  %v813_v29 = vrot.slane %v784_v10, %v812_v21  ;;  %v1737_v9 = vmov 1983009808  }
 0x195   :  { %v473_v10 = vunpack.c.l.s4 %v1737_v9 }
 0x196   :  { %v815_v37 = vsel %vm814_vm3, %v813_v29, %v808_v28  ;;  %v487_v28 = vcombine.low %v2177_v44, %v2186_v53  ;;  %v488_v29 = vcombine.low %v2195_v60, %v2202_v1 }
 0x197   :  { %v796_v15 = vpop.permute.xlu0 %795  ;;  %v793_v16 = vpop.permute.xlu1 %792 }
 0x198   :  { %v837_v40 = vrot.slane %v796_v15, %v812_v21  ;;  %v833_v31 = vrot.slane %v793_v16, %v807_v18  ;;  %v474_v15 = vunpack.c.0.s8 %v473_v10 }
 0x19a   :  { %v838_v41 = vsel %vm814_vm3, %v837_v40, %v833_v31  ;;  %v2268_v16 = vsub.s32 %v474_v15, %v2063_v42 }
 0x19b   :  { %v799_v23 = vpop.permute.xlu0 %798  ;;  %v787_v25 = vpop.permute.xlu1 %786 }
 0x19c   :  { %v842_v32 = vrot.slane %v799_v23, %v819_v22  ;;  %v820_v33 = vrot.slane %v787_v25, %v819_v22  ;;  %v485_v17 = vrot.slane %v471_v13, %v2268_v16  ;;  %v495_v40 = vrot.slane %v487_v28, %v2268_v16 }
 0x19e   :  { %v843_v47 = vsel %vm821_vm4, %v842_v32, %v838_v41  ;;  %v822_v48 = vsel %vm821_vm4, %v820_v33, %v815_v37 }
 0x19f   :  { %v802_v34 = vpop.permute.xlu0 %801  ;;  %v790_v36 = vpop.permute.xlu1 %789 }
 0x1a0   :  { %v847_v43 = vrot.slane %v802_v34, %v826_v26  ;;  %v827_v45 = vrot.slane %v790_v36, %v826_v26 }
 0x1a2   :  { %v848_v50 = vsel %vm828_vm5, %v847_v43, %v843_v47  ;;  %v829_v52 = vsel %vm828_vm5, %v827_v45, %v822_v48 }
 0x1a3   :  { %v849_v57 = vsel %vm174_vm2, %v848_v50, %v829_v52 }
 0x1a4   :  { %1645 = vmatmul.mubr.msk.f32.vlgmr.msra.gmra.mxu0 %vm850_vm6, %v849_v57  ;;  %1646 = vmatmul.mubr.msk.f32.vlgmr.msra.gmra.mxu1 %vm850_vm6, %v849_v57 }
 0x1a5   :  { %1020 = vmatpush1.msra.mxu0 %v725_v54  ;;  %1091 = vmatpush1.msra.mxu1 %v727_v55 }
 0x1a6   :  { %1021 = vmatprep.subr.mxu0 %v718_v58  ;;  %1092 = vmatprep.subr.mxu1 %v720_v59 }
 0x1a7   :  { %1022 = vmatpush1.msra.mxu0 %v717_v61  ;;  %1093 = vmatpush1.msra.mxu1 %v719_v62 }
 0x1a8   :  { %1023 = vmatprep.subr.mxu0 %v710_v63  ;;  %1094 = vmatprep.subr.mxu1 %v712_v0 }
 0x1a9   :  { %1024 = vmatpush1.msra.mxu0 %v709_v2  ;;  %1095 = vmatpush1.msra.mxu1 %v711_v3 }
 0x1aa   :  { %1025 = vmatprep.subr.mxu0 %v702_v4  ;;  %1096 = vmatprep.subr.mxu1 %v704_v5 }
 0x1ab   :  { %1026 = vmatpush1.msra.mxu0 %v701_v6  ;;  %1059 = vmatprep.mubr.f32.mxu0 %v1735_v14 }
 0x1ac   :  { %1097 = vmatpush1.msra.mxu1 %v703_v7  ;;  %1130 = vmatprep.mubr.f32.mxu1 %v1735_v14  ;;  %v478_v14 = vrot.slane %v470_v12, %v2268_v16 }
 0x1ad   :  { %1647 = vmatmul.mubr.msk.f32.vlgmr.msra.gmra.mxu0 %vm850_vm6, %v849_v57  ;;  %1648 = vmatmul.mubr.msk.f32.vlgmr.msra.gmra.mxu1 %vm850_vm6, %v849_v57 }
 0x1ae   :  { %v486_v18 = vcombine.low %v478_v14, %v485_v17 }
 0x1b0   :  { %506 = vst [vmem:[#allocation4] sm:$0xff] %v486_v18 }
 0x1cc   :  { %v1207_v8 = vpop.xlane.xlu0 %1206 }
 0x1cd   :  { %v1208_v51 = vmax.f32 %v1207_v8, 1e-24 }
 0x1cf   :  { %1662 = vrsqrt.f32 %v1208_v51 }
 0x1dc   :  { %v2272_v21 = vpop.eup %1662 }
 0x1dd   :  { %v1211_v22 = vmul.f32 %v2272_v21, %v2142_v20  ;;  %v1213_v23 = vmul.f32 %v2272_v21, %v2168_v35  ;;  %v502_v20 = vrot.slane %v488_v29, %v2268_v16  ;;  %v729_v35 = vld [vmem:[%s2385_s8] sm:$0xff] }
 0x1de   :  { %v734_v32 = vrot.slane %v729_v35, %v2070_v46  ;;  %v742_v33 = vrot.slane %v729_v35, %v142_v11  ;;  %v738_v34 = vrot.slane %v729_v35, %v2079_v38  ;;  %v746_v36 = vrot.slane %v729_v35, %v146_v24 }
 0x1df   :  { %v2278_v25 = vmul.f32 14.285714, %v1211_v22  ;;  %v2280_v26 = vmul.f32 14.285714, %v1213_v23  ;;  %v503_v31 = vcombine.low %v495_v40, %v502_v20  ;;  %v750_v55 = vrot.slane %v729_v35, %v150_v30 }
 0x1e0   :  { %v758_v57 = vrot.slane %v729_v35, %v158_v49  ;;  %v754_v0 = vrot.slane %v729_v35, %v154_v39  ;;  %v762_v49 = vrot.slane %v729_v35, %v162_v56 }
 0x1e1   :  { %1325 = vmatprep.mubr.f32.mxu0 %v2278_v25  ;;  %1395 = vmatprep.mubr.f32.mxu1 %v2280_v26  ;;  %507 = vst [vmem:[#allocation4 + $0x8] sm:$0xff] %v503_v31 }
 0x264   :  { %v919_v37 = vpop.f32.mrf.mxu0  ;;  %v990_v41 = vpop.f32.mrf.mxu1 }
 0x265   :  { %v2299_v43 = vadd.f32 %v919_v37, %v734_v32  ;;  %v2301_v45 = vadd.f32 %v990_v41, %v742_v33  ;;  %v1210_v41 = vmul.f32 %v2272_v21, %v2140_v19 }
 0x266   :  { %v921_v47 = vpop.f32.mrf.mxu0  ;;  %v992_v48 = vpop.f32.mrf.mxu1 }
 0x267   :  { %v1218_v50 = vmul.f32 %v2299_v43, %v2299_v43  ;;  %v2305_v46 = vadd.f32 %v921_v47, %v738_v34  ;;  %v2307_v52 = vadd.f32 %v992_v48, %v746_v36  ;;  %v1220_v38 = vmul.f32 %v2301_v45, %v2301_v45 }
 0x268   :  { %v1212_v47 = vmul.f32 %v2272_v21, %v2158_v27  ;;  %v1214_v48 = vmul.f32 %v2272_v21, %v2177_v44 }
 0x269   :  { %v1145_v11 = vcombine.low %v2299_v43, %v2305_v46  ;;  %v1219_v24 = vmul.f32 %v2305_v46, %v2305_v46  ;;  %v1146_v54 = vcombine.low %v2301_v45, %v2307_v52  ;;  %v1226_v58 = vsel %vm615_vm1, %v1218_v50, 0.0 }
 0x26a   :  { %v1221_v61 = vmul.f32 %v2307_v52, %v2307_v52  ;;  %v1229_v30 = vsel %vm615_vm1, %v1220_v38, 0.0  ;;  %v1253_v50 = vmul.f32 14.285714, %v1210_v41  ;;  %v1216_v38 = vmul.f32 %v2272_v21, %v2195_v60 }
 0x26b   :  { %v1227_v59 = vsel %vm615_vm1, %v1219_v24, 0.0  ;;  %v1153_v62 = vrot.slane %v1145_v11, %v2268_v16  ;;  %v1160_v2 = vrot.slane %v1146_v54, %v2268_v16  ;;  %v1255_v24 = vmul.f32 14.285714, %v1212_v47 }
 0x26c   :  { %v1228_v63 = vadd.f32 %v1227_v59, %v1226_v58  ;;  %v1231_v51 = vsel %vm615_vm1, %v1221_v61, 0.0  ;;  %v1257_v19 = vmul.f32 14.285714, %v1214_v48 }
 0x26d   :  { %v1061_v3 = vpop.f32.mrf.mxu0  ;;  %v1132_v4 = vpop.f32.mrf.mxu1  ;;  %v1161_v8 = vcombine.low %v1153_v62, %v1160_v2 }
 0x26e   :  { %v1230_v5 = vadd.f32 %v1229_v30, %v1228_v63  ;;  %v1062_v6 = vadd.f32 %v1061_v3, %v750_v55  ;;  %v1133_v7 = vadd.f32 %v1132_v4, %v758_v57  ;;  %v1217_v55 = vmul.f32 %v2272_v21, %v2202_v1 }
 0x26f   :  { %v1063_v9 = vpop.f32.mrf.mxu0  ;;  %v1134_v10 = vpop.f32.mrf.mxu1  ;;  %1181 = vst [vmem:[#allocation6] sm:$0xff] %v1161_v8 }
 0x270   :  { %v1232_v12 = vadd.f32 %v1231_v51, %v1230_v5  ;;  %v1222_v13 = vmul.f32 %v1062_v6, %v1062_v6  ;;  %v1064_v39 = vadd.f32 %v1063_v9, %v754_v0  ;;  %v1135_v15 = vadd.f32 %v1134_v10, %v762_v49 }
 0x271   :  { %v1224_v17 = vmul.f32 %v1133_v7, %v1133_v7  ;;  %v1259_v0 = vmul.f32 14.285714, %v1216_v38 }
 0x272   :  { %v1233_v14 = vsel %vm615_vm1, %v1222_v13, 0.0  ;;  %v1162_v18 = vcombine.low %v1062_v6, %v1064_v39  ;;  %v1223_v22 = vmul.f32 %v1064_v39, %v1064_v39  ;;  %v1163_v42 = vcombine.low %v1133_v7, %v1135_v15 }
 0x273   :  { %v1234_v56 = vadd.f32 %v1233_v14, %v1232_v12  ;;  %v1225_v23 = vmul.f32 %v1135_v15, %v1135_v15  ;;  %v1237_v31 = vsel %vm615_vm1, %v1224_v17, 0.0 }
 0x274   :  { %v1235_v28 = vsel %vm615_vm1, %v1223_v22, 0.0  ;;  %v1170_v29 = vrot.slane %v1162_v18, %v2268_v16  ;;  %v1177_v20 = vrot.slane %v1163_v42, %v2268_v16  ;;  %v1215_v16 = vmul.f32 %v2272_v21, %v2186_v53 }
 0x275   :  { %v1236_v40 = vadd.f32 %v1235_v28, %v1234_v56  ;;  %v1239_v33 = vsel %vm615_vm1, %v1225_v23, 0.0 }
 0x276   :  { %v1178_v32 = vcombine.low %v1170_v29, %v1177_v20  ;;  %v1258_v54 = vmul.f32 14.285714, %v1215_v16  ;;  %v1579_v16 = vld [vmem:[%s2386_s9] sm:$0x3] }
 0x277   :  { %v1238_v35 = vadd.f32 %v1237_v31, %v1236_v40 }
 0x278   :  { %1182 = vst [vmem:[#allocation6 + $0x8] sm:$0xff] %v1178_v32 }
 0x279   :  { %v1240_v34 = vadd.f32 %v1239_v33, %v1238_v35 }
 0x27b   :  { %1241 = vadd.xlane.f32.xlu1 %v1240_v34 }
 0x304   :  { %v1242_v36 = vpop.xlane.xlu1 %1241 }
 0x305   :  { %v1243_v37 = vmax.f32 %v1242_v36, 1e-24 }
 0x307   :  { %1664 = vrsqrt.f32 %v1243_v37 }
 0x314   :  { %v1665_v11 = vpop.eup %1664 }
 0x315   :  { %v1246_v57 = vmul.f32 %v1665_v11, %v2305_v46  ;;  %v1248_v27 = vmul.f32 %v1665_v11, %v2307_v52  ;;  %v1245_v53 = vmul.f32 %v1665_v11, %v2299_v43  ;;  %v1247_v58 = vmul.f32 %v1665_v11, %v2301_v45 }
 0x316   :  { %v1250_v44 = vmul.f32 %v1665_v11, %v1064_v39  ;;  %v1252_v59 = vmul.f32 %v1665_v11, %v1135_v15  ;;  %v1249_v61 = vmul.f32 %v1665_v11, %v1062_v6  ;;  %v1251_v62 = vmul.f32 %v1665_v11, %v1133_v7 }
 0x317   :  { %1291 = vmatprep.subr.mxu0 %v1246_v57  ;;  %v1555_v60 = vmul.f32 %v2278_v25, %v1246_v57  ;;  %1361 = vmatprep.subr.mxu1 %v1248_v27  ;;  %v1554_v63 = vmul.f32 %v1253_v50, %v1245_v53  ;;  %v1556_v1 = vmul.f32 %v1255_v24, %v1247_v58  ;;  %v1260_v46 = vmul.f32 14.285714, %v1217_v55 }
 0x318   :  { %1292 = vmatpush1.xpose.msra.mxu0 %v1245_v53  ;;  %1362 = vmatpush1.xpose.msra.mxu1 %v1247_v58  ;;  %v1559_v21 = vmul.f32 %v1258_v54, %v1250_v44  ;;  %v1558_v52 = vmul.f32 %v1257_v19, %v1249_v61  ;;  %v1557_v45 = vmul.f32 %v2280_v26, %v1248_v27 }
 0x319   :  { %v1563_v43 = vsel %vm615_vm1, %v1555_v60, 0.0  ;;  %1431 = vmatprep.subr.mxu0 %v1250_v44  ;;  %1501 = vmatprep.subr.mxu1 %v1252_v59  ;;  %v1562_v2 = vsel %vm615_vm1, %v1554_v63, 0.0  ;;  %v1560_v30 = vmul.f32 %v1259_v0, %v1251_v62  ;;  %v1561_v25 = vmul.f32 %v1260_v46, %v1252_v59 }
 0x31a   :  { %v1564_v3 = vadd.f32 %v1563_v43, %v1562_v2  ;;  %v1565_v4 = vsel %vm615_vm1, %v1556_v1, 0.0  ;;  %v1567_v5 = vsel %vm615_vm1, %v1557_v45, 0.0  ;;  %v1569_v26 = vsel %vm615_vm1, %v1558_v52, 0.0 }
 0x31b   :  { %1326 = vmatmul.mubr.f32.vlgmr.msra.gmra.mxu0 %v1253_v50  ;;  %1396 = vmatmul.mubr.f32.vlgmr.msra.gmra.mxu1 %v1255_v24  ;;  %v1571_v8 = vsel %vm615_vm1, %v1559_v21, 0.0  ;;  %v1573_v9 = vsel %vm615_vm1, %v1560_v30, 0.0  ;;  %v1575_v12 = vsel %vm615_vm1, %v1561_v25, 0.0 }
 0x31c   :  { %1432 = vmatpush1.xpose.msra.mxu0 %v1249_v61  ;;  %1465 = vmatprep.mubr.f32.mxu0 %v1258_v54  ;;  %v1566_v49 = vadd.f32 %v1565_v4, %v1564_v3 }
 0x31d   :  { %1502 = vmatpush1.xpose.msra.mxu1 %v1251_v62  ;;  %1535 = vmatprep.mubr.f32.mxu1 %v1260_v46 }
 0x31e   :  { %v1568_v6 = vadd.f32 %v1567_v5, %v1566_v49 }
 0x31f   :  { %1466 = vmatmul.mubr.f32.vlgmr.msra.gmra.mxu0 %v1257_v19 }
 0x320   :  { %1536 = vmatmul.mubr.f32.vlgmr.msra.gmra.mxu1 %v1259_v0  ;;  %v1570_v7 = vadd.f32 %v1569_v26, %v1568_v6 }
 0x322   :  { %v1572_v51 = vadd.f32 %v1571_v8, %v1570_v7 }
 0x324   :  { %v1574_v10 = vadd.f32 %v1573_v9, %v1572_v51 }
 0x326   :  { %v1576_v13 = vadd.f32 %v1575_v12, %v1574_v10 }
 0x3db   :  { %v1327_v39 = vpop.f32.mrf.mxu0  ;;  %v1397_v15 = vpop.f32.mrf.mxu1 }
 0x3dc   :  { %v1398_v18 = vadd.f32 %v1397_v15, %v1327_v39 }
 0x3dd   :  { %v1329_v14 = vpop.f32.mrf.mxu0  ;;  %v1399_v17 = vpop.f32.mrf.mxu1 }
 0x3df   :  { %v1467_v22 = vpop.f32.mrf.mxu0 }
 0x3e0   :  { %v1468_v42 = vadd.f32 %v1467_v22, %v1398_v18  ;;  %v1537_v56 = vpop.f32.mrf.mxu1 }
 0x3e1   :  { %v1469_v23 = vpop.f32.mrf.mxu0 }
 0x3e2   :  { %v1538_v28 = vadd.f32 %v1537_v56, %v1468_v42  ;;  %v1539_v29 = vpop.f32.mrf.mxu1 }
 0x3e4   :  { %v1542_v40 = vsel %vm1541_vm7, %v1538_v28, -inf }
 0x3e5   :  { %1543 = vmax.xlane.f32.xlu0 %v1542_v40 }
 0x3e9   :  { %1577 = vadd.xlane.f32.xlu0 %v1576_v13 }
 0x46e   :  { %v1544_v20 = vpop.xlane.xlu0 %1543 }
 0x46f   :  { %v1545_v31 = vsub.f32 %v1538_v28, %v1544_v20 }
 0x471   :  { %v1546_v35 = vmul.f32 1.442695, %v1545_v31 }
 0x472   :  { %v1578_v47 = vpop.xlane.xlu0 %1577 }
 0x473   :  { %1666 = vpow2.f32 %v1546_v35 }
 0x480   :  { %v1667_v32 = vpop.eup %1666 }
 0x481   :  { %v1548_v33 = vsel %vm1541_vm7, %v1667_v32, 0.0 }
 0x482   :  { %1549 = vadd.xlane.f32.xlu1 %v1548_v33 }
 0x50b   :  { %v1550_v34 = vpop.xlane.xlu1 %1549 }
 0x50c   :  { %1668 = vlog2.f32 %v1550_v34 }
 0x519   :  { %v1669_v36 = vpop.eup %1668 }
 0x51a   :  { %v1552_v37 = vmul.f32 0.6931472, %v1669_v36 }
 0x51c   :  { %v1553_v41 = vadd.f32 %v1552_v37, %v1544_v20 }
 0x51e   :  { %v1580_v48 = vsub.f32 %v1578_v47, %v1553_v41 }
 0x520   :  { %v1581_v50 = vmul.f32 %v1580_v48, %v1579_v16 }
 0x522   :  { %v1583_v38 = vsel %vm1582_vm8, %v1581_v50, 0.0 }
 0x523   :  { %1584 = vadd.xlane.f32.xlu1 %v1583_v38 }
 0x524   :  { %1681 = shalt.err (!%p1678_p4)
}
 0x525   :  { %1618 = dma.vmem_to_hbm [thread:$0]  %s1616_s6, 256, %s2388_s11, [#allocation5]  }
 0x526   :  { %s1739_s9 = smov [#allocation6]  }
 0x527   :  { %s1625_s28 = sshll.u32 %s1739_s9, 4  ;;  %s1626_s28 = int_to_ptr.vmem [resolvable:$true] %s1625_s28 }
 0x528   :  { %s1690_s3 = scalar_lea.vmem %s1626_s28, 256  ;;  %p1695_p6 = scmp.lt.s32.totalorder %s1626_s28, %s1626_s28 }
 0x529   :  { %p1691_p5 = scmp.ne.s32.totalorder %s1626_s28, %s1690_s3  ;;  %p1696_p7 = scmp.lt.s32.totalorder %s1690_s3, %s1690_s3 }
 0x52b   :  { %p1697_p8 = por %p1696_p7, %p1695_p6 }
 0x52d   :  { %p1698_p9 = pnand %p1697_p8, %p1691_p5 }
 0x52f   :  { %1701 = shalt.err (!%p1698_p9)
}
 0x530   :  { %1628 = dma.vmem_to_hbm [thread:$0]  %s1626_s28, 256, %s2389_s12, [#allocation5]   ;;  %vm1597_vm9 = vcmask 0  }
 0x531   :  { %s1740_s13 = smov [#allocation2]  }
 0x532   :  { %s1605_s14 = sshll.u32 %s1740_s13, 4  ;;  %s1606_s14 = int_to_ptr.vmem [resolvable:$true] %s1605_s14 }
 0x533   :  { %s1710_s15 = scalar_lea.vmem %s1606_s14, 16  ;;  %s1714_s12 = scalar_lea.vmem %s1606_s14, 32 }
 0x534   :  { %p1711_p10 = scmp.ne.s32.totalorder %s1606_s14, %s1710_s15  ;;  %p1715_p11 = scmp.lt.s32.totalorder %s1606_s14, %s1606_s14 }
 0x535   :  { %p1716_p12 = scmp.lt.s32.totalorder %s1714_s12, %s1710_s15 }
 0x537   :  { %p1717_p13 = por %p1716_p12, %p1715_p11 }
 0x539   :  { %p1718_p0 = pnand %p1717_p13, %p1711_p10 }
 0x5ac   :  { %v1585_v11 = vpop.xlane.xlu1 %1584 }
 0x5ad   :  { %v1586_v24 = vrot.slane %v1585_v11, 4 }
 0x5af   :  { %v1587_v54 = vadd.f32 %v1586_v24, %v1585_v11 }
 0x5b1   :  { %v1588_v55 = vrot.slane %v1587_v54, 2 }
 0x5b3   :  { %v1589_v19 = vadd.f32 %v1588_v55, %v1587_v54 }
 0x5b5   :  { %v1590_v57 = vrot.slane %v1589_v19, 1 }
 0x5b7   :  { %v1591_v27 = vadd.f32 %v1590_v57, %v1589_v19 }
 0x5b9   :  { %1649 = vpush %v1591_v27 }
 0x5ea   :  { %s1650_s11 = spop %1649 }
 0x5eb   :  { %v1593_v53 = vstv %s1650_s11 }
 0x5ec   :  { %v1594_v58 = vsub.f32 0.0, %v1593_v53 }
 0x5ee   :  { %v1596_v44 = vmul.f32 0.5, %v1594_v58 }
 0x5f0   :  { %1598 = vst.msk [vmem:[#allocation2] sm:$0x1] %vm1597_vm9, %v1596_v44 }
 0x5f1   :  { %1721 = shalt.err (!%p1718_p0)
}
 0x5f2   :  { %1608 = dma.vmem_to_hbm [thread:$0]  %s1606_s14, 16, %s2387_s10, [#allocation3]  }
 0x5f3   :  { %1730 = dma.done.wait [#allocation3], 16  }
 0x5f4   :  { %1731 = vsyncadd [#allocation3], 4294967280 }
 0x5f5   :  { %1732 = dma.done.wait [#allocation5], 512  }
 0x5f6   :  { %1733 = vsyncadd [#allocation5], 4294966784 }
 0x5f7   :  { %1638 = vsyncpa [#allocation3], 1 }
 0x5f8   :  { %1639 = vsyncpa [#allocation5], 1 }

</bundles_post_ra>
